<compile_context>
chip_gen: v5e
topology: v5e:2x2
jax: 0.10.0
libtpu: 0.0.40
codegen_flags: <defaults>
</compile_context>

<pallas_src>
import jax
import jax.numpy as jnp
from jax.experimental import pallas as pl
from jax.experimental.pallas import tpu as pltpu

# ---- problem sizes (from the PyTorch module) --------------------------------
batch_size = 10
hiddenDim = 3
inputDim = 3
outputDim = 2
step_size = 5

GATE_PITCH = 8  # per-gate sublane pitch: gate k lives in rows [k*8, k*8+H)


# ---- Pallas kernel -----------------------------------------------------------
def lstm_linear_kernel(x_ref, h0_ref, c0_ref, wx_ref, wh_ref, b_ref,
                       wout_ref, bout_ref, out_ref):
    """Whole-sequence LSTM + Linear in one invocation.

    Shapes (feature-major, batch on the lane dim):
      x_ref   : (T, I, B)
      h0, c0  : (H, B)
      wx      : (4*GP, I)  -- rows [k*GP, k*GP+H) = W_ih for gate k (i, f, g, o)
      wh      : (4*GP, H)  -- rows [k*GP, k*GP+H) = W_hh for gate k
      b       : (4*GP, B)  -- (b_ih + b_hh), pre-broadcast over batch
      wout    : (O, H), bout : (O, B)
      out_ref : (T, O, B)
    """
    T = x_ref.shape[0]
    H = h0_ref.shape[0]
    GP = GATE_PITCH

    wx = wx_ref[...]
    wh = wh_ref[...]
    b = b_ref[...]
    wout = wout_ref[...]
    bout = bout_ref[...]

    h = h0_ref[...]          # (H, B)
    c = c0_ref[...]          # (H, B)

    # Fully unrolled T-step recurrence (T is a small static constant).
    for t in range(T):
        # Fused gate pre-activations: 2 MXU matmuls per step (was 8).
        z = (jnp.dot(wx, x_ref[t], preferred_element_type=jnp.float32)
             + jnp.dot(wh, h, preferred_element_type=jnp.float32)
             + b)                                     # (4*GP, B)

        # PyTorch gate order: input, forget, cell(g), output.
        # Slices are 8-sublane aligned (offsets 0, 8, 16, 24).
        i_g = jax.nn.sigmoid(z[0 * GP:0 * GP + H, :])
        f_g = jax.nn.sigmoid(z[1 * GP:1 * GP + H, :])
        g_g = jnp.tanh(z[2 * GP:2 * GP + H, :])
        o_g = jax.nn.sigmoid(z[3 * GP:3 * GP + H, :])

        c = f_g * c + i_g * g_g
        h = o_g * jnp.tanh(c)

        # Fused Linear(hidden -> output); the whole (T, O, B) block is written
        # back to HBM once at kernel end (single output DMA).
        out_ref[t] = jnp.dot(wout, h, preferred_element_type=jnp.float32) + bout


# ---- wrapper -----------------------------------------------------------------
def lstm_simple_forward(x, h0, c0, w_ih, w_hh, b_ih, b_hh, w_out, b_out):
    """x: (T, B, I); h0, c0: (B, H); w_ih/w_hh: (4H, I)/(4H, H); w_out: (O, H)."""
    T, B, I = x.shape
    H = h0.shape[-1]
    O = w_out.shape[0]
    GP = GATE_PITCH

    # Feature-major layout: batch goes on the lane dimension.
    xT = jnp.transpose(x, (0, 2, 1)).astype(jnp.float32)       # (T, I, B)

    # Fused, sublane-pitched gate weights / bias (built once, outside kernel).
    wx = jnp.zeros((4 * GP, I), jnp.float32)
    wh = jnp.zeros((4 * GP, H), jnp.float32)
    bcol = jnp.zeros((4 * GP,), jnp.float32)
    for k in range(4):
        wx = wx.at[k * GP:k * GP + H, :].set(w_ih[k * H:(k + 1) * H, :])
        wh = wh.at[k * GP:k * GP + H, :].set(w_hh[k * H:(k + 1) * H, :])
        bcol = bcol.at[k * GP:k * GP + H].set(
            b_ih[k * H:(k + 1) * H] + b_hh[k * H:(k + 1) * H])
    b = jnp.broadcast_to(bcol[:, None], (4 * GP, B))            # (4*GP, B)
    bout = jnp.broadcast_to(b_out[:, None], (O, B))             # (O, B)

    out = pl.pallas_call(
        lstm_linear_kernel,
        out_shape=jax.ShapeDtypeStruct((T, O, B), jnp.float32),
        grid_spec=pltpu.PrefetchScalarGridSpec(
            num_scalar_prefetch=0,
            grid=(1,),                                  # grid collapsed: one invocation
            in_specs=[
                pl.BlockSpec((T, I, B), lambda i: (0, 0, 0)),   # whole input sequence
                pl.BlockSpec((H, B), lambda i: (0, 0)),          # h0
                pl.BlockSpec((H, B), lambda i: (0, 0)),          # c0
                pl.BlockSpec((4 * GP, I), lambda i: (0, 0)),     # fused W_ih
                pl.BlockSpec((4 * GP, H), lambda i: (0, 0)),     # fused W_hh
                pl.BlockSpec((4 * GP, B), lambda i: (0, 0)),     # fused bias
                pl.BlockSpec((O, H), lambda i: (0, 0)),          # W_out
                pl.BlockSpec((O, B), lambda i: (0, 0)),          # b_out
            ],
            out_specs=pl.BlockSpec((T, O, B), lambda i: (0, 0, 0)),
        ),
        compiler_params=pltpu.CompilerParams(
            dimension_semantics=("arbitrary",)),
    )(xT, h0.T, c0.T, wx, wh, b, w_out, bout)

    # (T, O, B) -> (T, B, O) -> (T*B, O): matches torch.stack([...]).view(-1, outputDim)
    return jnp.transpose(out, (0, 2, 1)).reshape(-1, O)


# ---- pure-JAX reference (for correctness check) -------------------------------
def lstm_simple_ref(x, h0, c0, w_ih, w_hh, b_ih, b_hh, w_out, b_out):
    H = h0.shape[-1]

    def step(carry, x_t):
        h, c = carry
        z = x_t @ w_ih.T + h @ w_hh.T + b_ih + b_hh
        i = jax.nn.sigmoid(z[:, 0:H])
        f = jax.nn.sigmoid(z[:, H:2 * H])
        g = jnp.tanh(z[:, 2 * H:3 * H])
        o = jax.nn.sigmoid(z[:, 3 * H:4 * H])
        c = f * c + i * g
        h = o * jnp.tanh(c)
        return (h, c), h

    _, hs = jax.lax.scan(step, (h0, c0), x)
    out = hs @ w_out.T + b_out
    return out.reshape(-1, w_out.shape[0])


# ---- main ---------------------------------------------------------------------
if __name__ == "__main__":
    key = jax.random.PRNGKey(0)
    ks = jax.random.split(key, 9)

    # Deterministic synthetic parameters (shapes match nn.LSTM / nn.Linear init).
    bound = 1.0 / jnp.sqrt(hiddenDim)
    w_ih = jax.random.uniform(ks[0], (4 * hiddenDim, inputDim), jnp.float32, -bound, bound)
    w_hh = jax.random.uniform(ks[1], (4 * hiddenDim, hiddenDim), jnp.float32, -bound, bound)
    b_ih = jax.random.uniform(ks[2], (4 * hiddenDim,), jnp.float32, -bound, bound)
    b_hh = jax.random.uniform(ks[3], (4 * hiddenDim,), jnp.float32, -bound, bound)
    w_out = jax.random.uniform(ks[4], (outputDim, hiddenDim), jnp.float32, -bound, bound)
    b_out = jax.random.uniform(ks[5], (outputDim,), jnp.float32, -bound, bound)

    # Module's persistent initial states: hidden1 ~ randn (h0), hidden2 ~ rand (c0).
    h0 = jax.random.normal(ks[6], (batch_size, hiddenDim), jnp.float32)
    c0 = jax.random.uniform(ks[7], (batch_size, hiddenDim), jnp.float32)

    # Input: (seq_len, batch, input_dim)
    x = jax.random.normal(ks[8], (step_size, batch_size, inputDim), jnp.float32)

    out = lstm_simple_forward(x, h0, c0, w_ih, w_hh, b_ih, b_hh, w_out, b_out)
    out = jax.block_until_ready(out)

    ref = lstm_simple_ref(x, h0, c0, w_ih, w_hh, b_ih, b_hh, w_out, b_out)
    assert out.shape == (step_size * batch_size, outputDim), out.shape
    assert jnp.allclose(out, ref, atol=1e-4, rtol=1e-4), "mismatch vs reference"

    print("KERNEL_OK")
</pallas_src>

<mosaic_0001>
module attributes {stable_mosaic.version = 11 : i64} {
  func.func @lstm_linear_kernel(%arg0: i32, %arg1: memref<5x3x10xf32, #tpu.memory_space<vmem>>, %arg2: memref<3x10xf32, #tpu.memory_space<vmem>>, %arg3: memref<3x10xf32, #tpu.memory_space<vmem>>, %arg4: memref<32x3xf32, #tpu.memory_space<vmem>>, %arg5: memref<32x3xf32, #tpu.memory_space<vmem>>, %arg6: memref<32x10xf32, #tpu.memory_space<vmem>>, %arg7: memref<2x3xf32, #tpu.memory_space<vmem>>, %arg8: memref<2x10xf32, #tpu.memory_space<vmem>>, %arg9: memref<5x2x10xf32, #tpu.memory_space<vmem>>) attributes {dimension_semantics = [#tpu.dimension_semantics<arbitrary>], iteration_bounds = array<i64: 1>, scalar_prefetch = 0 : i64, scratch_operands = 0 : i64, tpu.core_type = #tpu.core_type<tc>, window_params = [{pipeline_mode = #tpu.pipeline_mode<synchronous>, transform_indices = @transform_0, window_bounds = array<i64: 5, 3, 10>}, {pipeline_mode = #tpu.pipeline_mode<synchronous>, transform_indices = @transform_1, window_bounds = array<i64: 3, 10>}, {pipeline_mode = #tpu.pipeline_mode<synchronous>, transform_indices = @transform_2, window_bounds = array<i64: 3, 10>}, {pipeline_mode = #tpu.pipeline_mode<synchronous>, transform_indices = @transform_3, window_bounds = array<i64: 32, 3>}, {pipeline_mode = #tpu.pipeline_mode<synchronous>, transform_indices = @transform_4, window_bounds = array<i64: 32, 3>}, {pipeline_mode = #tpu.pipeline_mode<synchronous>, transform_indices = @transform_5, window_bounds = array<i64: 32, 10>}, {pipeline_mode = #tpu.pipeline_mode<synchronous>, transform_indices = @transform_6, window_bounds = array<i64: 2, 3>}, {pipeline_mode = #tpu.pipeline_mode<synchronous>, transform_indices = @transform_7, window_bounds = array<i64: 2, 10>}, {pipeline_mode = #tpu.pipeline_mode<synchronous>, transform_indices = @transform_8, window_bounds = array<i64: 5, 2, 10>}]} {
    %c0 = arith.constant 0 : index
    %c0_0 = arith.constant 0 : index
    %0 = vector.load %arg4[%c0, %c0_0] : memref<32x3xf32, #tpu.memory_space<vmem>>, vector<32x3xf32>
    %c0_1 = arith.constant 0 : index
    %c0_2 = arith.constant 0 : index
    %1 = vector.load %arg5[%c0_1, %c0_2] : memref<32x3xf32, #tpu.memory_space<vmem>>, vector<32x3xf32>
    %c0_3 = arith.constant 0 : index
    %c0_4 = arith.constant 0 : index
    %2 = vector.load %arg6[%c0_3, %c0_4] : memref<32x10xf32, #tpu.memory_space<vmem>>, vector<32x10xf32>
    %c0_5 = arith.constant 0 : index
    %c0_6 = arith.constant 0 : index
    %3 = vector.load %arg7[%c0_5, %c0_6] : memref<2x3xf32, #tpu.memory_space<vmem>>, vector<2x3xf32>
    %c0_7 = arith.constant 0 : index
    %c0_8 = arith.constant 0 : index
    %4 = vector.load %arg8[%c0_7, %c0_8] : memref<2x10xf32, #tpu.memory_space<vmem>>, vector<2x10xf32>
    %c0_9 = arith.constant 0 : index
    %c0_10 = arith.constant 0 : index
    %5 = vector.load %arg2[%c0_9, %c0_10] : memref<3x10xf32, #tpu.memory_space<vmem>>, vector<3x10xf32>
    %c0_11 = arith.constant 0 : index
    %c0_12 = arith.constant 0 : index
    %6 = vector.load %arg3[%c0_11, %c0_12] : memref<3x10xf32, #tpu.memory_space<vmem>>, vector<3x10xf32>
    %c0_13 = arith.constant 0 : index
    %c0_14 = arith.constant 0 : index
    %c0_15 = arith.constant 0 : index
    %7 = vector.load %arg1[%c0_13, %c0_14, %c0_15] : memref<5x3x10xf32, #tpu.memory_space<vmem>>, vector<1x3x10xf32>
    %8 = vector.shape_cast %7 : vector<1x3x10xf32> to vector<3x10xf32>
    %cst = arith.constant dense<0.000000e+00> : vector<32x10xf32>
    %9 = tpu.matmul %0, %8, %cst {dimension_numbers = #tpu.dot_dimension_numbers<[1], [0], [0], [1], [0, 0, 1, 1], [], []>} : vector<32x3xf32>, vector<3x10xf32>, vector<32x10xf32> -> vector<32x10xf32>
    %cst_16 = arith.constant dense<0.000000e+00> : vector<32x10xf32>
    %10 = tpu.matmul %1, %5, %cst_16 {dimension_numbers = #tpu.dot_dimension_numbers<[1], [0], [0], [1], [0, 0, 1, 1], [], []>} : vector<32x3xf32>, vector<3x10xf32>, vector<32x10xf32> -> vector<32x10xf32>
    %11 = arith.addf %9, %10 : vector<32x10xf32>
    %12 = arith.addf %11, %2 : vector<32x10xf32>
    %13 = vector.extract_strided_slice %12 {offsets = [0, 0], sizes = [3, 10], strides = [1, 1]} : vector<32x10xf32> to vector<3x10xf32>
    %14 = arith.negf %13 : vector<3x10xf32>
    %15 = math.exp %14 : vector<3x10xf32>
    %cst_17 = arith.constant 1.000000e+00 : f32
    %16 = vector.broadcast %cst_17 : f32 to vector<3x10xf32>
    %17 = arith.addf %16, %15 : vector<3x10xf32>
    %18 = arith.divf %16, %17 : vector<3x10xf32>
    %19 = vector.extract_strided_slice %12 {offsets = [8, 0], sizes = [3, 10], strides = [1, 1]} : vector<32x10xf32> to vector<3x10xf32>
    %20 = arith.negf %19 : vector<3x10xf32>
    %21 = math.exp %20 : vector<3x10xf32>
    %cst_18 = arith.constant 1.000000e+00 : f32
    %22 = vector.broadcast %cst_18 : f32 to vector<3x10xf32>
    %23 = arith.addf %22, %21 : vector<3x10xf32>
    %24 = arith.divf %22, %23 : vector<3x10xf32>
    %25 = vector.extract_strided_slice %12 {offsets = [16, 0], sizes = [3, 10], strides = [1, 1]} : vector<32x10xf32> to vector<3x10xf32>
    %26 = math.tanh %25 : vector<3x10xf32>
    %27 = vector.extract_strided_slice %12 {offsets = [24, 0], sizes = [3, 10], strides = [1, 1]} : vector<32x10xf32> to vector<3x10xf32>
    %28 = arith.negf %27 : vector<3x10xf32>
    %29 = math.exp %28 : vector<3x10xf32>
    %cst_19 = arith.constant 1.000000e+00 : f32
    %30 = vector.broadcast %cst_19 : f32 to vector<3x10xf32>
    %31 = arith.addf %30, %29 : vector<3x10xf32>
    %32 = arith.divf %30, %31 : vector<3x10xf32>
    %33 = arith.mulf %24, %6 : vector<3x10xf32>
    %34 = arith.mulf %18, %26 : vector<3x10xf32>
    %35 = arith.addf %33, %34 : vector<3x10xf32>
    %36 = math.tanh %35 : vector<3x10xf32>
    %37 = arith.mulf %32, %36 : vector<3x10xf32>
    %cst_20 = arith.constant dense<0.000000e+00> : vector<2x10xf32>
    %38 = tpu.matmul %3, %37, %cst_20 {dimension_numbers = #tpu.dot_dimension_numbers<[1], [0], [0], [1], [0, 0, 1, 1], [], []>} : vector<2x3xf32>, vector<3x10xf32>, vector<2x10xf32> -> vector<2x10xf32>
    %39 = arith.addf %38, %4 : vector<2x10xf32>
    %c0_21 = arith.constant 0 : index
    %c0_22 = arith.constant 0 : index
    %c0_23 = arith.constant 0 : index
    %40 = vector.load %arg9[%c0_21, %c0_22, %c0_23] : memref<5x2x10xf32, #tpu.memory_space<vmem>>, vector<1x2x10xf32>
    %41 = vector.shape_cast %40 : vector<1x2x10xf32> to vector<2x10xf32>
    %42 = vector.shape_cast %39 : vector<2x10xf32> to vector<1x2x10xf32>
    tpu.vector_store %arg9[%c0_21, %c0_22, %c0_23], %42 {strides = array<i32>} : memref<5x2x10xf32, #tpu.memory_space<vmem>>, vector<1x2x10xf32>,
    %c1 = arith.constant 1 : index
    %c0_24 = arith.constant 0 : index
    %c0_25 = arith.constant 0 : index
    %43 = vector.load %arg1[%c1, %c0_24, %c0_25] : memref<5x3x10xf32, #tpu.memory_space<vmem>>, vector<1x3x10xf32>
    %44 = vector.shape_cast %43 : vector<1x3x10xf32> to vector<3x10xf32>
    %cst_26 = arith.constant dense<0.000000e+00> : vector<32x10xf32>
    %45 = tpu.matmul %0, %44, %cst_26 {dimension_numbers = #tpu.dot_dimension_numbers<[1], [0], [0], [1], [0, 0, 1, 1], [], []>} : vector<32x3xf32>, vector<3x10xf32>, vector<32x10xf32> -> vector<32x10xf32>
    %cst_27 = arith.constant dense<0.000000e+00> : vector<32x10xf32>
    %46 = tpu.matmul %1, %37, %cst_27 {dimension_numbers = #tpu.dot_dimension_numbers<[1], [0], [0], [1], [0, 0, 1, 1], [], []>} : vector<32x3xf32>, vector<3x10xf32>, vector<32x10xf32> -> vector<32x10xf32>
    %47 = arith.addf %45, %46 : vector<32x10xf32>
    %48 = arith.addf %47, %2 : vector<32x10xf32>
    %49 = vector.extract_strided_slice %48 {offsets = [0, 0], sizes = [3, 10], strides = [1, 1]} : vector<32x10xf32> to vector<3x10xf32>
    %50 = arith.negf %49 : vector<3x10xf32>
    %51 = math.exp %50 : vector<3x10xf32>
    %cst_28 = arith.constant 1.000000e+00 : f32
    %52 = vector.broadcast %cst_28 : f32 to vector<3x10xf32>
    %53 = arith.addf %52, %51 : vector<3x10xf32>
    %54 = arith.divf %52, %53 : vector<3x10xf32>
    %55 = vector.extract_strided_slice %48 {offsets = [8, 0], sizes = [3, 10], strides = [1, 1]} : vector<32x10xf32> to vector<3x10xf32>
    %56 = arith.negf %55 : vector<3x10xf32>
    %57 = math.exp %56 : vector<3x10xf32>
    %cst_29 = arith.constant 1.000000e+00 : f32
    %58 = vector.broadcast %cst_29 : f32 to vector<3x10xf32>
    %59 = arith.addf %58, %57 : vector<3x10xf32>
    %60 = arith.divf %58, %59 : vector<3x10xf32>
    %61 = vector.extract_strided_slice %48 {offsets = [16, 0], sizes = [3, 10], strides = [1, 1]} : vector<32x10xf32> to vector<3x10xf32>
    %62 = math.tanh %61 : vector<3x10xf32>
    %63 = vector.extract_strided_slice %48 {offsets = [24, 0], sizes = [3, 10], strides = [1, 1]} : vector<32x10xf32> to vector<3x10xf32>
    %64 = arith.negf %63 : vector<3x10xf32>
    %65 = math.exp %64 : vector<3x10xf32>
    %cst_30 = arith.constant 1.000000e+00 : f32
    %66 = vector.broadcast %cst_30 : f32 to vector<3x10xf32>
    %67 = arith.addf %66, %65 : vector<3x10xf32>
    %68 = arith.divf %66, %67 : vector<3x10xf32>
    %69 = arith.mulf %60, %35 : vector<3x10xf32>
    %70 = arith.mulf %54, %62 : vector<3x10xf32>
    %71 = arith.addf %69, %70 : vector<3x10xf32>
    %72 = math.tanh %71 : vector<3x10xf32>
    %73 = arith.mulf %68, %72 : vector<3x10xf32>
    %cst_31 = arith.constant dense<0.000000e+00> : vector<2x10xf32>
    %74 = tpu.matmul %3, %73, %cst_31 {dimension_numbers = #tpu.dot_dimension_numbers<[1], [0], [0], [1], [0, 0, 1, 1], [], []>} : vector<2x3xf32>, vector<3x10xf32>, vector<2x10xf32> -> vector<2x10xf32>
    %75 = arith.addf %74, %4 : vector<2x10xf32>
    %c1_32 = arith.constant 1 : index
    %c0_33 = arith.constant 0 : index
    %c0_34 = arith.constant 0 : index
    %76 = vector.load %arg9[%c1_32, %c0_33, %c0_34] : memref<5x2x10xf32, #tpu.memory_space<vmem>>, vector<1x2x10xf32>
    %77 = vector.shape_cast %76 : vector<1x2x10xf32> to vector<2x10xf32>
    %78 = vector.shape_cast %75 : vector<2x10xf32> to vector<1x2x10xf32>
    tpu.vector_store %arg9[%c1_32, %c0_33, %c0_34], %78 {strides = array<i32>} : memref<5x2x10xf32, #tpu.memory_space<vmem>>, vector<1x2x10xf32>,
    %c2 = arith.constant 2 : index
    %c0_35 = arith.constant 0 : index
    %c0_36 = arith.constant 0 : index
    %79 = vector.load %arg1[%c2, %c0_35, %c0_36] : memref<5x3x10xf32, #tpu.memory_space<vmem>>, vector<1x3x10xf32>
    %80 = vector.shape_cast %79 : vector<1x3x10xf32> to vector<3x10xf32>
    %cst_37 = arith.constant dense<0.000000e+00> : vector<32x10xf32>
    %81 = tpu.matmul %0, %80, %cst_37 {dimension_numbers = #tpu.dot_dimension_numbers<[1], [0], [0], [1], [0, 0, 1, 1], [], []>} : vector<32x3xf32>, vector<3x10xf32>, vector<32x10xf32> -> vector<32x10xf32>
    %cst_38 = arith.constant dense<0.000000e+00> : vector<32x10xf32>
    %82 = tpu.matmul %1, %73, %cst_38 {dimension_numbers = #tpu.dot_dimension_numbers<[1], [0], [0], [1], [0, 0, 1, 1], [], []>} : vector<32x3xf32>, vector<3x10xf32>, vector<32x10xf32> -> vector<32x10xf32>
    %83 = arith.addf %81, %82 : vector<32x10xf32>
    %84 = arith.addf %83, %2 : vector<32x10xf32>
    %85 = vector.extract_strided_slice %84 {offsets = [0, 0], sizes = [3, 10], strides = [1, 1]} : vector<32x10xf32> to vector<3x10xf32>
    %86 = arith.negf %85 : vector<3x10xf32>
    %87 = math.exp %86 : vector<3x10xf32>
    %cst_39 = arith.constant 1.000000e+00 : f32
    %88 = vector.broadcast %cst_39 : f32 to vector<3x10xf32>
    %89 = arith.addf %88, %87 : vector<3x10xf32>
    %90 = arith.divf %88, %89 : vector<3x10xf32>
    %91 = vector.extract_strided_slice %84 {offsets = [8, 0], sizes = [3, 10], strides = [1, 1]} : vector<32x10xf32> to vector<3x10xf32>
    %92 = arith.negf %91 : vector<3x10xf32>
    %93 = math.exp %92 : vector<3x10xf32>
    %cst_40 = arith.constant 1.000000e+00 : f32
    %94 = vector.broadcast %cst_40 : f32 to vector<3x10xf32>
    %95 = arith.addf %94, %93 : vector<3x10xf32>
    %96 = arith.divf %94, %95 : vector<3x10xf32>
    %97 = vector.extract_strided_slice %84 {offsets = [16, 0], sizes = [3, 10], strides = [1, 1]} : vector<32x10xf32> to vector<3x10xf32>
    %98 = math.tanh %97 : vector<3x10xf32>
    %99 = vector.extract_strided_slice %84 {offsets = [24, 0], sizes = [3, 10], strides = [1, 1]} : vector<32x10xf32> to vector<3x10xf32>
    %100 = arith.negf %99 : vector<3x10xf32>
    %101 = math.exp %100 : vector<3x10xf32>
    %cst_41 = arith.constant 1.000000e+00 : f32
    %102 = vector.broadcast %cst_41 : f32 to vector<3x10xf32>
    %103 = arith.addf %102, %101 : vector<3x10xf32>
    %104 = arith.divf %102, %103 : vector<3x10xf32>
    %105 = arith.mulf %96, %71 : vector<3x10xf32>
    %106 = arith.mulf %90, %98 : vector<3x10xf32>
    %107 = arith.addf %105, %106 : vector<3x10xf32>
    %108 = math.tanh %107 : vector<3x10xf32>
    %109 = arith.mulf %104, %108 : vector<3x10xf32>
    %cst_42 = arith.constant dense<0.000000e+00> : vector<2x10xf32>
    %110 = tpu.matmul %3, %109, %cst_42 {dimension_numbers = #tpu.dot_dimension_numbers<[1], [0], [0], [1], [0, 0, 1, 1], [], []>} : vector<2x3xf32>, vector<3x10xf32>, vector<2x10xf32> -> vector<2x10xf32>
    %111 = arith.addf %110, %4 : vector<2x10xf32>
    %c2_43 = arith.constant 2 : index
    %c0_44 = arith.constant 0 : index
    %c0_45 = arith.constant 0 : index
    %112 = vector.load %arg9[%c2_43, %c0_44, %c0_45] : memref<5x2x10xf32, #tpu.memory_space<vmem>>, vector<1x2x10xf32>
    %113 = vector.shape_cast %112 : vector<1x2x10xf32> to vector<2x10xf32>
    %114 = vector.shape_cast %111 : vector<2x10xf32> to vector<1x2x10xf32>
    tpu.vector_store %arg9[%c2_43, %c0_44, %c0_45], %114 {strides = array<i32>} : memref<5x2x10xf32, #tpu.memory_space<vmem>>, vector<1x2x10xf32>,
    %c3 = arith.constant 3 : index
    %c0_46 = arith.constant 0 : index
    %c0_47 = arith.constant 0 : index
    %115 = vector.load %arg1[%c3, %c0_46, %c0_47] : memref<5x3x10xf32, #tpu.memory_space<vmem>>, vector<1x3x10xf32>
    %116 = vector.shape_cast %115 : vector<1x3x10xf32> to vector<3x10xf32>
    %cst_48 = arith.constant dense<0.000000e+00> : vector<32x10xf32>
    %117 = tpu.matmul %0, %116, %cst_48 {dimension_numbers = #tpu.dot_dimension_numbers<[1], [0], [0], [1], [0, 0, 1, 1], [], []>} : vector<32x3xf32>, vector<3x10xf32>, vector<32x10xf32> -> vector<32x10xf32>
    %cst_49 = arith.constant dense<0.000000e+00> : vector<32x10xf32>
    %118 = tpu.matmul %1, %109, %cst_49 {dimension_numbers = #tpu.dot_dimension_numbers<[1], [0], [0], [1], [0, 0, 1, 1], [], []>} : vector<32x3xf32>, vector<3x10xf32>, vector<32x10xf32> -> vector<32x10xf32>
    %119 = arith.addf %117, %118 : vector<32x10xf32>
    %120 = arith.addf %119, %2 : vector<32x10xf32>
    %121 = vector.extract_strided_slice %120 {offsets = [0, 0], sizes = [3, 10], strides = [1, 1]} : vector<32x10xf32> to vector<3x10xf32>
    %122 = arith.negf %121 : vector<3x10xf32>
    %123 = math.exp %122 : vector<3x10xf32>
    %cst_50 = arith.constant 1.000000e+00 : f32
    %124 = vector.broadcast %cst_50 : f32 to vector<3x10xf32>
    %125 = arith.addf %124, %123 : vector<3x10xf32>
    %126 = arith.divf %124, %125 : vector<3x10xf32>
    %127 = vector.extract_strided_slice %120 {offsets = [8, 0], sizes = [3, 10], strides = [1, 1]} : vector<32x10xf32> to vector<3x10xf32>
    %128 = arith.negf %127 : vector<3x10xf32>
    %129 = math.exp %128 : vector<3x10xf32>
    %cst_51 = arith.constant 1.000000e+00 : f32
    %130 = vector.broadcast %cst_51 : f32 to vector<3x10xf32>
    %131 = arith.addf %130, %129 : vector<3x10xf32>
    %132 = arith.divf %130, %131 : vector<3x10xf32>
    %133 = vector.extract_strided_slice %120 {offsets = [16, 0], sizes = [3, 10], strides = [1, 1]} : vector<32x10xf32> to vector<3x10xf32>
    %134 = math.tanh %133 : vector<3x10xf32>
    %135 = vector.extract_strided_slice %120 {offsets = [24, 0], sizes = [3, 10], strides = [1, 1]} : vector<32x10xf32> to vector<3x10xf32>
    %136 = arith.negf %135 : vector<3x10xf32>
    %137 = math.exp %136 : vector<3x10xf32>
    %cst_52 = arith.constant 1.000000e+00 : f32
    %138 = vector.broadcast %cst_52 : f32 to vector<3x10xf32>
    %139 = arith.addf %138, %137 : vector<3x10xf32>
    %140 = arith.divf %138, %139 : vector<3x10xf32>
    %141 = arith.mulf %132, %107 : vector<3x10xf32>
    %142 = arith.mulf %126, %134 : vector<3x10xf32>
    %143 = arith.addf %141, %142 : vector<3x10xf32>
    %144 = math.tanh %143 : vector<3x10xf32>
    %145 = arith.mulf %140, %144 : vector<3x10xf32>
    %cst_53 = arith.constant dense<0.000000e+00> : vector<2x10xf32>
    %146 = tpu.matmul %3, %145, %cst_53 {dimension_numbers = #tpu.dot_dimension_numbers<[1], [0], [0], [1], [0, 0, 1, 1], [], []>} : vector<2x3xf32>, vector<3x10xf32>, vector<2x10xf32> -> vector<2x10xf32>
    %147 = arith.addf %146, %4 : vector<2x10xf32>
    %c3_54 = arith.constant 3 : index
    %c0_55 = arith.constant 0 : index
    %c0_56 = arith.constant 0 : index
    %148 = vector.load %arg9[%c3_54, %c0_55, %c0_56] : memref<5x2x10xf32, #tpu.memory_space<vmem>>, vector<1x2x10xf32>
    %149 = vector.shape_cast %148 : vector<1x2x10xf32> to vector<2x10xf32>
    %150 = vector.shape_cast %147 : vector<2x10xf32> to vector<1x2x10xf32>
    tpu.vector_store %arg9[%c3_54, %c0_55, %c0_56], %150 {strides = array<i32>} : memref<5x2x10xf32, #tpu.memory_space<vmem>>, vector<1x2x10xf32>,
    %c4 = arith.constant 4 : index
    %c0_57 = arith.constant 0 : index
    %c0_58 = arith.constant 0 : index
    %151 = vector.load %arg1[%c4, %c0_57, %c0_58] : memref<5x3x10xf32, #tpu.memory_space<vmem>>, vector<1x3x10xf32>
    %152 = vector.shape_cast %151 : vector<1x3x10xf32> to vector<3x10xf32>
    %cst_59 = arith.constant dense<0.000000e+00> : vector<32x10xf32>
    %153 = tpu.matmul %0, %152, %cst_59 {dimension_numbers = #tpu.dot_dimension_numbers<[1], [0], [0], [1], [0, 0, 1, 1], [], []>} : vector<32x3xf32>, vector<3x10xf32>, vector<32x10xf32> -> vector<32x10xf32>
    %cst_60 = arith.constant dense<0.000000e+00> : vector<32x10xf32>
    %154 = tpu.matmul %1, %145, %cst_60 {dimension_numbers = #tpu.dot_dimension_numbers<[1], [0], [0], [1], [0, 0, 1, 1], [], []>} : vector<32x3xf32>, vector<3x10xf32>, vector<32x10xf32> -> vector<32x10xf32>
    %155 = arith.addf %153, %154 : vector<32x10xf32>
    %156 = arith.addf %155, %2 : vector<32x10xf32>
    %157 = vector.extract_strided_slice %156 {offsets = [0, 0], sizes = [3, 10], strides = [1, 1]} : vector<32x10xf32> to vector<3x10xf32>
    %158 = arith.negf %157 : vector<3x10xf32>
    %159 = math.exp %158 : vector<3x10xf32>
    %cst_61 = arith.constant 1.000000e+00 : f32
    %160 = vector.broadcast %cst_61 : f32 to vector<3x10xf32>
    %161 = arith.addf %160, %159 : vector<3x10xf32>
    %162 = arith.divf %160, %161 : vector<3x10xf32>
    %163 = vector.extract_strided_slice %156 {offsets = [8, 0], sizes = [3, 10], strides = [1, 1]} : vector<32x10xf32> to vector<3x10xf32>
    %164 = arith.negf %163 : vector<3x10xf32>
    %165 = math.exp %164 : vector<3x10xf32>
    %cst_62 = arith.constant 1.000000e+00 : f32
    %166 = vector.broadcast %cst_62 : f32 to vector<3x10xf32>
    %167 = arith.addf %166, %165 : vector<3x10xf32>
    %168 = arith.divf %166, %167 : vector<3x10xf32>
    %169 = vector.extract_strided_slice %156 {offsets = [16, 0], sizes = [3, 10], strides = [1, 1]} : vector<32x10xf32> to vector<3x10xf32>
    %170 = math.tanh %169 : vector<3x10xf32>
    %171 = vector.extract_strided_slice %156 {offsets = [24, 0], sizes = [3, 10], strides = [1, 1]} : vector<32x10xf32> to vector<3x10xf32>
    %172 = arith.negf %171 : vector<3x10xf32>
    %173 = math.exp %172 : vector<3x10xf32>
    %cst_63 = arith.constant 1.000000e+00 : f32
    %174 = vector.broadcast %cst_63 : f32 to vector<3x10xf32>
    %175 = arith.addf %174, %173 : vector<3x10xf32>
    %176 = arith.divf %174, %175 : vector<3x10xf32>
    %177 = arith.mulf %168, %143 : vector<3x10xf32>
    %178 = arith.mulf %162, %170 : vector<3x10xf32>
    %179 = arith.addf %177, %178 : vector<3x10xf32>
    %180 = math.tanh %179 : vector<3x10xf32>
    %181 = arith.mulf %176, %180 : vector<3x10xf32>
    %cst_64 = arith.constant dense<0.000000e+00> : vector<2x10xf32>
    %182 = tpu.matmul %3, %181, %cst_64 {dimension_numbers = #tpu.dot_dimension_numbers<[1], [0], [0], [1], [0, 0, 1, 1], [], []>} : vector<2x3xf32>, vector<3x10xf32>, vector<2x10xf32> -> vector<2x10xf32>
    %183 = arith.addf %182, %4 : vector<2x10xf32>
    %c4_65 = arith.constant 4 : index
    %c0_66 = arith.constant 0 : index
    %c0_67 = arith.constant 0 : index
    %184 = vector.load %arg9[%c4_65, %c0_66, %c0_67] : memref<5x2x10xf32, #tpu.memory_space<vmem>>, vector<1x2x10xf32>
    %185 = vector.shape_cast %184 : vector<1x2x10xf32> to vector<2x10xf32>
    %186 = vector.shape_cast %183 : vector<2x10xf32> to vector<1x2x10xf32>
    tpu.vector_store %arg9[%c4_65, %c0_66, %c0_67], %186 {strides = array<i32>} : memref<5x2x10xf32, #tpu.memory_space<vmem>>, vector<1x2x10xf32>,
    return
  }
  func.func @transform_0(%arg0: i32) -> (i32, i32, i32) {
    %c0_i32 = arith.constant 0 : i32
    %c0_i32_0 = arith.constant 0 : i32
    %c0_i32_1 = arith.constant 0 : i32
    %c0_i32_2 = arith.constant 0 : i32
    return %c0_i32, %c0_i32_0, %c0_i32_1 : i32, i32, i32
  }
  func.func @transform_1(%arg0: i32) -> (i32, i32) {
    %c0_i32 = arith.constant 0 : i32
    %c0_i32_0 = arith.constant 0 : i32
    %c0_i32_1 = arith.constant 0 : i32
    return %c0_i32, %c0_i32_0 : i32, i32
  }
  func.func @transform_2(%arg0: i32) -> (i32, i32) {
    %c0_i32 = arith.constant 0 : i32
    %c0_i32_0 = arith.constant 0 : i32
    %c0_i32_1 = arith.constant 0 : i32
    return %c0_i32, %c0_i32_0 : i32, i32
  }
  func.func @transform_3(%arg0: i32) -> (i32, i32) {
    %c0_i32 = arith.constant 0 : i32
    %c0_i32_0 = arith.constant 0 : i32
    %c0_i32_1 = arith.constant 0 : i32
    return %c0_i32, %c0_i32_0 : i32, i32
  }
  func.func @transform_4(%arg0: i32) -> (i32, i32) {
    %c0_i32 = arith.constant 0 : i32
    %c0_i32_0 = arith.constant 0 : i32
    %c0_i32_1 = arith.constant 0 : i32
    return %c0_i32, %c0_i32_0 : i32, i32
  }
  func.func @transform_5(%arg0: i32) -> (i32, i32) {
    %c0_i32 = arith.constant 0 : i32
    %c0_i32_0 = arith.constant 0 : i32
    %c0_i32_1 = arith.constant 0 : i32
    return %c0_i32, %c0_i32_0 : i32, i32
  }
  func.func @transform_6(%arg0: i32) -> (i32, i32) {
    %c0_i32 = arith.constant 0 : i32
    %c0_i32_0 = arith.constant 0 : i32
    %c0_i32_1 = arith.constant 0 : i32
    return %c0_i32, %c0_i32_0 : i32, i32
  }
  func.func @transform_7(%arg0: i32) -> (i32, i32) {
    %c0_i32 = arith.constant 0 : i32
    %c0_i32_0 = arith.constant 0 : i32
    %c0_i32_1 = arith.constant 0 : i32
    return %c0_i32, %c0_i32_0 : i32, i32
  }
  func.func @transform_8(%arg0: i32) -> (i32, i32, i32) {
    %c0_i32 = arith.constant 0 : i32
    %c0_i32_0 = arith.constant 0 : i32
    %c0_i32_1 = arith.constant 0 : i32
    %c0_i32_2 = arith.constant 0 : i32
    return %c0_i32, %c0_i32_0, %c0_i32_1 : i32, i32, i32
  }
}

</mosaic_0001>

<bundles_post_ra>
// kernel: tpu_custom_call.1
= control target key start
LH: loop header
LB: loop body
LE: loop exit
PB: predicated region body
PF: predicated region fallthrough
CT: control target
= control target key end

     0   :  { %vm60_vm0 = vcmask 1042432   ;;  %vm47_vm1 = vcmask 23552   ;;  %s1353_s0 = inlined_call_operand.vmem [shape: f32[5,3,10], index: 0, kind: input, shape index: {}]   ;;  %s1354_s1 = inlined_call_operand.vmem [shape: f32[3,10], index: 1, kind: input, shape index: {}]   ;;  %s1355_s2 = inlined_call_operand.vmem [shape: f32[3,10], index: 2, kind: input, shape index: {}]   ;;  %s1356_s3 = inlined_call_operand.vmem [shape: f32[32,3], index: 3, kind: input, shape index: {}]   ;;  %s1357_s4 = inlined_call_operand.vmem [shape: f32[32,3], index: 4, kind: input, shape index: {}]   ;;  %s1358_s5 = inlined_call_operand.vmem [shape: f32[32,10], index: 5, kind: input, shape index: {}]   ;;  %s1359_s6 = inlined_call_operand.vmem [shape: f32[2,3], index: 6, kind: input, shape index: {}]   ;;  %s1360_s7 = inlined_call_operand.vmem [shape: f32[2,10], index: 7, kind: input, shape index: {}]   ;;  %s1361_s8 = inlined_call_operand.hbm [shape: f32[5,2,10], index: 8, kind: output, shape index: {}]  }
   0x1   :  { %v44_v0 = vld [vmem:[%s1354_s1] sm:$0x7]  ;;  %v1122_v3 = vld [vmem:[%s1356_s3 + $0x8] sm:$0xff] }
   0x2   :  { %v1113_v1 = vld [vmem:[%s1357_s4] sm:$0xff]  ;;  %870 = vmatpush.msk.msra.mxu0 %vm60_vm0, %v44_v0 }
   0x3   :  { %v46_v2 = vld [vmem:[%s1353_s0] sm:$0x7]  ;;  %871 = vmatmul.msk.f32.vlgmr.msra.gmra.mxu0 %vm47_vm1, %v1113_v1 }
   0x4   :  { %949 = vmatpush.msk.msra.mxu1 %vm60_vm0, %v46_v2  ;;  %875 = vmatpush.msk.msrb.mxu0 %vm60_vm0, %v46_v2 }
   0x5   :  { %877 = vmatmul.msk.f32.vlgmr.msra.gmra.mxu1 %vm47_vm1, %v1122_v3 }
   0x6   :  { %13 = vsyncpa [#allocation3], 0  ;;  %v1133_v4 = vld [vmem:[%s1357_s4 + $0x8] sm:$0xff]  ;;  %v1138_v5 = vld [vmem:[%s1356_s3 + $0x10] sm:$0xff]  ;;  %vm230_vm14 = vcmask 74752   ;;  %s858_s20 = sshll.u32 %s1361_s8, 4  ;;  %s859_s20 = int_to_ptr.hbm [resolvable:$true] %s858_s20 }
   0x7   :  { %v1147_v6 = vld [vmem:[%s1357_s4 + $0x10] sm:$0xff]  ;;  %v1152_v7 = vld [vmem:[%s1356_s3 + $0x18] sm:$0xff]  ;;  %v1168_v9 = vld [vmem:[%s1356_s3] sm:$0xff]  ;;  %s1060_s21 = smov 32   ;;  %s1061_s22 = smov 2  }
   0x8   :  { %v1161_v8 = vld [vmem:[%s1357_s4 + $0x18] sm:$0xff]  ;;  %v1175_v13 = vld [vmem:[%s1358_s5 + $0x8] sm:$0xff]  ;;  %v1187_v27 = vld [vmem:[%s1358_s5] sm:$0xff] }
   0x9   :  { %v1181_v21 = vld [vmem:[%s1358_s5 + $0x18] sm:$0xff]  ;;  %v1193_v41 = vld [vmem:[%s1358_s5 + $0x10] sm:$0xff]  ;;  %v45_v58 = vld [vmem:[%s1355_s2] sm:$0x7] }
   0xb   :  { %872 = vmatmul.msk.f32.gmra.mxu0 %vm47_vm1, %v1133_v4 }
   0xd   :  { %878 = vmatmul.msk.f32.gmra.mxu1 %vm47_vm1, %v1138_v5 }
  0x13   :  { %873 = vmatmul.msk.f32.gmra.mxu0 %vm47_vm1, %v1147_v6 }
  0x15   :  { %879 = vmatmul.msk.f32.gmra.mxu1 %vm47_vm1, %v1152_v7 }
  0x1b   :  { %874 = vmatmul.msk.f32.gmra.mxu0 %vm47_vm1, %v1161_v8 }
  0x23   :  { %876 = vmatmul.msk.f32.vlgmr.msrb.gmra.mxu0 %vm47_vm1, %v1168_v9 }
  0x80   :  { %v81_v10 = vpop.f32.mrf.mxu0 }
  0x82   :  { %v128_v11 = vpop.f32.mrf.mxu1 }
  0x88   :  { %v84_v12 = vpop.f32.mrf.mxu0 }
  0x89   :  { %v129_v14 = vadd.f32 %v128_v11, %v84_v12 }
  0x8a   :  { %v131_v16 = vpop.f32.mrf.mxu1 }
  0x8b   :  { %v138_v15 = vadd.f32 %v129_v14, %v1175_v13 }
  0x8d   :  { %v881_v17 = vmul.f32 -1.442695, %v138_v15 }
  0x8f   :  { %953 = vpow2.f32 %v881_v17 }
  0x90   :  { %v87_v18 = vpop.f32.mrf.mxu0 }
  0x91   :  { %v132_v39 = vadd.f32 %v131_v16, %v87_v18 }
  0x92   :  { %v134_v19 = vpop.f32.mrf.mxu1 }
  0x93   :  { %v139_v44 = vadd.f32 %v132_v39, %v1193_v41 }
  0x95   :  { %v954_v23 = vpop.eup %953 }
  0x96   :  { %v163_v25 = vadd.f32 1.0, %v954_v23  ;;  %v885_v23 = vld [vmem:[%s1353_s0 + $0x4] sm:$0x7] }
  0x98   :  { %v90_v20 = vpop.f32.mrf.mxu0  ;;  %955 = vrcp.f32 %v163_v25  ;;  %v175_v47 = vand.u32 2147483648, %v163_v25  ;;  %vm169_vm3 = vweird.f32 %v163_v25  ;;  %v173_v50 = vand.u32 2147483647, %v163_v25 }
  0x99   :  { %v135_v22 = vadd.f32 %v134_v19, %v90_v20 }
  0x9a   :  { %v176_v55 = vor.u32 1.1754944e-38, %v175_v47  ;;  %vm174_vm7 = vcmp.eq.f32.partialorder %v173_v50, 8.507059e+37 }
  0x9b   :  { %v140_v24 = vadd.f32 %v135_v22, %v1181_v21  ;;  %v1205_v22 = vld [vmem:[%s1359_s6] sm:$0x3] }
  0x9d   :  { %v882_v26 = vmul.f32 -1.442695, %v140_v24  ;;  %v1234_v24 = vld [vmem:[%s1360_s7] sm:$0x3] }
  0x9e   :  { %v956_v32 = vpop.eup %955 }
  0x9f   :  { %957 = vpow2.f32 %v882_v26  ;;  %v165_v34 = vmul.f32 %v956_v32, %v163_v25  ;;  %vm170_vm2 = vweird.f32 %v956_v32 }
  0xa0   :  { %v125_v28 = vpop.f32.mrf.mxu0  ;;  %vm171_vm4 = vmor %vm169_vm3, %vm170_vm2 }
  0xa1   :  { %v126_v29 = vadd.f32 %v125_v28, %v81_v10  ;;  %v166_v38 = vsub.f32 1.0, %v165_v34 }
  0xa3   :  { %v137_v30 = vadd.f32 %v126_v29, %v1187_v27  ;;  %v167_v40 = vmul.f32 %v956_v32, %v166_v38 }
  0xa5   :  { %v880_v31 = vmul.f32 -1.442695, %v137_v30  ;;  %v958_v33 = vpop.eup %957  ;;  %v168_v46 = vadd.f32 %v956_v32, %v167_v40 }
  0xa6   :  { %v183_v35 = vadd.f32 1.0, %v958_v33 }
  0xa7   :  { %959 = vpow2.f32 %v880_v31  ;;  %v172_v54 = vsel %vm171_vm4, %v956_v32, %v168_v46 }
  0xa8   :  { %961 = vrcp.f32 %v183_v35  ;;  %v177_v60 = vsel %vm174_vm7, %v176_v55, %v172_v54  ;;  %v195_v14 = vand.u32 2147483648, %v183_v35  ;;  %vm189_vm11 = vweird.f32 %v183_v35 }
  0xa9   :  { %v199_v2 = vmul.f32 %v177_v60, %v45_v58  ;;  %v193_v15 = vand.u32 2147483647, %v183_v35 }
  0xaa   :  { %v196_v17 = vor.u32 1.1754944e-38, %v195_v14 }
  0xab   :  { %vm194_vm13 = vcmp.eq.f32.partialorder %v193_v15, 8.507059e+37 }
  0xad   :  { %v960_v36 = vpop.eup %959 }
  0xae   :  { %v144_v37 = vadd.f32 1.0, %v960_v36  ;;  %v962_v42 = vpop.eup %961 }
  0xaf   :  { %v185_v48 = vmul.f32 %v962_v42, %v183_v35  ;;  %vm190_vm10 = vweird.f32 %v962_v42 }
  0xb0   :  { %963 = vrcp.f32 %v144_v37  ;;  %v156_v51 = vand.u32 2147483648, %v144_v37  ;;  %v154_v53 = vand.u32 2147483647, %v144_v37  ;;  %vm150_vm6 = vweird.f32 %v144_v37  ;;  %vm191_vm12 = vmor %vm189_vm11, %vm190_vm10 }
  0xb1   :  { %965 = vtanh.f32 %v139_v44  ;;  %v186_v56 = vsub.f32 1.0, %v185_v48 }
  0xb2   :  { %v157_v59 = vor.u32 1.1754944e-38, %v156_v51  ;;  %vm155_vm9 = vcmp.eq.f32.partialorder %v154_v53, 8.507059e+37 }
  0xb3   :  { %v187_v0 = vmul.f32 %v962_v42, %v186_v56 }
  0xb5   :  { %v188_v12 = vadd.f32 %v962_v42, %v187_v0 }
  0xb6   :  { %v964_v43 = vpop.eup %963 }
  0xb7   :  { %v146_v45 = vmul.f32 %v964_v43, %v144_v37  ;;  %vm151_vm5 = vweird.f32 %v964_v43  ;;  %v966_v62 = vpop.eup %965  ;;  %v192_v16 = vsel %vm191_vm12, %v962_v42, %v188_v12 }
  0xb8   :  { %vm152_vm8 = vmor %vm150_vm6, %vm151_vm5  ;;  %v197_v19 = vsel %vm194_vm13, %v196_v17, %v192_v16 }
  0xb9   :  { %v147_v49 = vsub.f32 1.0, %v146_v45 }
  0xbb   :  { %v148_v52 = vmul.f32 %v964_v43, %v147_v49 }
  0xbd   :  { %v149_v57 = vadd.f32 %v964_v43, %v148_v52 }
  0xbf   :  { %v153_v61 = vsel %vm152_vm8, %v964_v43, %v149_v57  ;;  %v901_v43 = vld [vmem:[%s1353_s0 + $0x8] sm:$0x7] }
  0xc0   :  { %v158_v63 = vsel %vm155_vm9, %v157_v59, %v153_v61 }
  0xc1   :  { %v200_v10 = vmul.f32 %v966_v62, %v158_v63 }
  0xc3   :  { %v1199_v11 = vadd.f32 %v200_v10, %v199_v2 }
  0xc5   :  { %967 = vtanh.f32 %v1199_v11 }
  0xcb   :  { %v968_v18 = vpop.eup %967 }
  0xcc   :  { %v203_v20 = vmul.f32 %v968_v18, %v197_v19 }
  0xce   :  { %883 = vmatpush.msk.msra.mxu2 %vm60_vm0, %v203_v20  ;;  %886 = vmatpush.msk.msra.mxu3 %vm60_vm0, %v203_v20 }
  0xcf   :  { %884 = vmatmul.msk.f32.vlgmr.msra.gmra.mxu2 %vm47_vm1, %v1205_v22  ;;  %887 = vmatmul.msk.f32.vlgmr.msra.gmra.mxu3 %vm47_vm1, %v1113_v1 }
  0xd0   :  { %891 = vmatpush.msk.msrb.mxu2 %vm60_vm0, %v885_v23  ;;  %907 = vmatpush.msk.msrb.mxu3 %vm60_vm0, %v901_v43 }
  0xd7   :  { %892 = vmatmul.msk.f32.vlgmr.msrb.gmra.mxu2 %vm47_vm1, %v1168_v9  ;;  %888 = vmatmul.msk.f32.gmra.mxu3 %vm47_vm1, %v1133_v4 }
  0xdf   :  { %893 = vmatmul.msk.f32.gmra.mxu2 %vm47_vm1, %v1122_v3  ;;  %889 = vmatmul.msk.f32.gmra.mxu3 %vm47_vm1, %v1147_v6 }
  0xe7   :  { %894 = vmatmul.msk.f32.gmra.mxu2 %vm47_vm1, %v1138_v5  ;;  %890 = vmatmul.msk.f32.gmra.mxu3 %vm47_vm1, %v1161_v8 }
  0xef   :  { %895 = vmatmul.msk.f32.gmra.mxu2 %vm47_vm1, %v1152_v7  ;;  %908 = vmatmul.msk.f32.vlgmr.msrb.gmra.mxu3 %vm47_vm1, %v1168_v9 }
  0xf7   :  { %909 = vmatmul.msk.f32.gmra.mxu3 %vm47_vm1, %v1122_v3 }
  0xff   :  { %910 = vmatmul.msk.f32.gmra.mxu3 %vm47_vm1, %v1138_v5 }
 0x107   :  { %911 = vmatmul.msk.f32.gmra.mxu3 %vm47_vm1, %v1152_v7 }
 0x152   :  { %v227_v25 = vpop.f32.mrf.mxu2  ;;  %v251_v26 = vpop.f32.mrf.mxu3 }
 0x153   :  { %v228_v28 = vadd.f32 %v227_v25, %v1234_v24 }
 0x155   :  { %231 = vst.msk [vmem:[#allocation2] sm:$0x3] %vm230_vm14, %v228_v28 }
 0x15a   :  { %v283_v29 = vpop.f32.mrf.mxu2  ;;  %v254_v31 = vpop.f32.mrf.mxu3 }
 0x15b   :  { %v284_v30 = vadd.f32 %v283_v29, %v251_v26 }
 0x15d   :  { %v295_v32 = vadd.f32 %v284_v30, %v1187_v27 }
 0x15f   :  { %v896_v33 = vmul.f32 -1.442695, %v295_v32 }
 0x161   :  { %969 = vpow2.f32 %v896_v33 }
 0x162   :  { %v286_v34 = vpop.f32.mrf.mxu2  ;;  %v257_v37 = vpop.f32.mrf.mxu3 }
 0x163   :  { %v287_v35 = vadd.f32 %v286_v34, %v254_v31 }
 0x165   :  { %v296_v36 = vadd.f32 %v287_v35, %v1175_v13 }
 0x167   :  { %v970_v38 = vpop.eup %969  ;;  %v897_v39 = vmul.f32 -1.442695, %v296_v36 }
 0x168   :  { %v302_v40 = vadd.f32 1.0, %v970_v38 }
 0x169   :  { %971 = vpow2.f32 %v897_v39 }
 0x16a   :  { %973 = vrcp.f32 %v302_v40  ;;  %v289_v42 = vpop.f32.mrf.mxu2  ;;  %v260_v47 = vpop.f32.mrf.mxu3  ;;  %v314_v63 = vand.u32 2147483648, %v302_v40  ;;  %vm308_vm3 = vweird.f32 %v302_v40  ;;  %v312_v2 = vand.u32 2147483647, %v302_v40 }
 0x16b   :  { %v290_v53 = vadd.f32 %v289_v42, %v257_v37 }
 0x16c   :  { %v315_v17 = vor.u32 1.1754944e-38, %v314_v63  ;;  %vm313_vm8 = vcmp.eq.f32.partialorder %v312_v2, 8.507059e+37 }
 0x16d   :  { %v297_v59 = vadd.f32 %v290_v53, %v1193_v41 }
 0x16f   :  { %v972_v44 = vpop.eup %971 }
 0x170   :  { %v974_v45 = vpop.eup %973  ;;  %v321_v46 = vadd.f32 1.0, %v972_v44 }
 0x171   :  { %v304_v48 = vmul.f32 %v974_v45, %v302_v40  ;;  %vm309_vm15 = vweird.f32 %v974_v45 }
 0x172   :  { %975 = vrcp.f32 %v321_v46  ;;  %v292_v49 = vpop.f32.mrf.mxu2  ;;  %v333_v60 = vand.u32 2147483648, %v321_v46  ;;  %v331_v0 = vand.u32 2147483647, %v321_v46  ;;  %vm327_vm4 = vweird.f32 %v321_v46  ;;  %vm310_vm5 = vmor %vm308_vm3, %vm309_vm15  ;;  %v438_v40 = vpop.f32.mrf.mxu3 }
 0x173   :  { %v293_v50 = vadd.f32 %v292_v49, %v260_v47  ;;  %v305_v51 = vsub.f32 1.0, %v304_v48 }
 0x174   :  { %v334_v14 = vor.u32 1.1754944e-38, %v333_v60  ;;  %vm332_vm7 = vcmp.eq.f32.partialorder %v331_v0, 8.507059e+37 }
 0x175   :  { %v298_v52 = vadd.f32 %v293_v50, %v1181_v21  ;;  %v306_v56 = vmul.f32 %v974_v45, %v305_v51 }
 0x177   :  { %v898_v54 = vmul.f32 -1.442695, %v298_v52  ;;  %v307_v61 = vadd.f32 %v974_v45, %v306_v56 }
 0x178   :  { %v976_v55 = vpop.eup %975 }
 0x179   :  { %v323_v57 = vmul.f32 %v976_v55, %v321_v46  ;;  %977 = vpow2.f32 %v898_v54  ;;  %vm328_vm2 = vweird.f32 %v976_v55  ;;  %v311_v15 = vsel %vm310_vm5, %v974_v45, %v307_v61 }
 0x17a   :  { %979 = vtanh.f32 %v297_v59  ;;  %vm329_vm6 = vmor %vm327_vm4, %vm328_vm2  ;;  %v316_v20 = vsel %vm313_vm8, %v315_v17, %v311_v15  ;;  %v441_v44 = vpop.f32.mrf.mxu3 }
 0x17b   :  { %v324_v58 = vsub.f32 1.0, %v323_v57 }
 0x17d   :  { %v325_v62 = vmul.f32 %v976_v55, %v324_v58 }
 0x17f   :  { %v978_v10 = vpop.eup %977  ;;  %v326_v12 = vadd.f32 %v976_v55, %v325_v62 }
 0x180   :  { %v341_v16 = vadd.f32 1.0, %v978_v10  ;;  %v980_v25 = vpop.eup %979 }
 0x181   :  { %v330_v18 = vsel %vm329_vm6, %v976_v55, %v326_v12  ;;  %v358_v26 = vmul.f32 %v980_v25, %v316_v20 }
 0x182   :  { %v335_v19 = vsel %vm332_vm7, %v334_v14, %v330_v18  ;;  %981 = vrcp.f32 %v341_v16  ;;  %v353_v32 = vand.u32 2147483648, %v341_v16  ;;  %v351_v34 = vand.u32 2147483647, %v341_v16  ;;  %v444_v50 = vpop.f32.mrf.mxu3 }
 0x183   :  { %v357_v23 = vmul.f32 %v335_v19, %v1199_v11  ;;  %vm347_vm10 = vweird.f32 %v341_v16 }
 0x184   :  { %v354_v11 = vor.u32 1.1754944e-38, %v353_v32  ;;  %vm352_vm12 = vcmp.eq.f32.partialorder %v351_v34, 8.507059e+37 }
 0x185   :  { %v1255_v29 = vadd.f32 %v358_v26, %v357_v23 }
 0x187   :  { %983 = vtanh.f32 %v1255_v29 }
 0x188   :  { %v982_v28 = vpop.eup %981 }
 0x189   :  { %v343_v30 = vmul.f32 %v982_v28, %v341_v16  ;;  %vm348_vm9 = vweird.f32 %v982_v28 }
 0x18a   :  { %vm349_vm11 = vmor %vm347_vm10, %vm348_vm9  ;;  %v447_v58 = vpop.f32.mrf.mxu3 }
 0x18b   :  { %v344_v31 = vsub.f32 1.0, %v343_v30 }
 0x18d   :  { %v345_v33 = vmul.f32 %v982_v28, %v344_v31  ;;  %v984_v37 = vpop.eup %983 }
 0x18f   :  { %v346_v35 = vadd.f32 %v982_v28, %v345_v33 }
 0x191   :  { %v350_v36 = vsel %vm349_vm11, %v982_v28, %v346_v35 }
 0x192   :  { %v355_v38 = vsel %vm352_vm12, %v354_v11, %v350_v36 }
 0x193   :  { %v361_v39 = vmul.f32 %v984_v37, %v355_v38 }
 0x195   :  { %899 = vmatpush.msk.msra.mxu0 %vm60_vm0, %v361_v39  ;;  %902 = vmatpush.msk.msrb.mxu1 %vm60_vm0, %v361_v39 }
 0x196   :  { %903 = vmatmul.msk.f32.vlgmr.msrb.gmra.mxu1 %vm47_vm1, %v1113_v1  ;;  %900 = vmatmul.msk.f32.vlgmr.msra.gmra.mxu0 %vm47_vm1, %v1205_v22 }
 0x19e   :  { %904 = vmatmul.msk.f32.gmra.mxu1 %vm47_vm1, %v1133_v4 }
 0x1a6   :  { %905 = vmatmul.msk.f32.gmra.mxu1 %vm47_vm1, %v1147_v6 }
 0x1ae   :  { %906 = vmatmul.msk.f32.gmra.mxu1 %vm47_vm1, %v1161_v8 }
 0x213   :  { %v406_v42 = vpop.f32.mrf.mxu1 }
 0x214   :  { %v439_v43 = vadd.f32 %v438_v40, %v406_v42 }
 0x216   :  { %v450_v45 = vadd.f32 %v439_v43, %v1187_v27 }
 0x218   :  { %v912_v46 = vmul.f32 -1.442695, %v450_v45 }
 0x21a   :  { %985 = vpow2.f32 %v912_v46 }
 0x21b   :  { %v409_v47 = vpop.f32.mrf.mxu1 }
 0x21c   :  { %v442_v48 = vadd.f32 %v441_v44, %v409_v47 }
 0x21e   :  { %v451_v49 = vadd.f32 %v442_v48, %v1175_v13 }
 0x220   :  { %v986_v51 = vpop.eup %985  ;;  %v913_v52 = vmul.f32 -1.442695, %v451_v49 }
 0x221   :  { %v457_v53 = vadd.f32 1.0, %v986_v51 }
 0x222   :  { %987 = vpow2.f32 %v913_v52  ;;  %v917_v52 = vld [vmem:[%s1353_s0 + $0xc] sm:$0x7] }
 0x223   :  { %989 = vrcp.f32 %v457_v53  ;;  %v412_v54 = vpop.f32.mrf.mxu1  ;;  %v469_v20 = vand.u32 2147483648, %v457_v53  ;;  %vm463_vm2 = vweird.f32 %v457_v53  ;;  %v467_v25 = vand.u32 2147483647, %v457_v53 }
 0x224   :  { %v445_v0 = vadd.f32 %v444_v50, %v412_v54 }
 0x225   :  { %v470_v33 = vor.u32 1.1754944e-38, %v469_v20  ;;  %vm468_vm7 = vcmp.eq.f32.partialorder %v467_v25, 8.507059e+37 }
 0x226   :  { %v452_v16 = vadd.f32 %v445_v0, %v1193_v41 }
 0x228   :  { %v988_v55 = vpop.eup %987 }
 0x229   :  { %v990_v56 = vpop.eup %989  ;;  %v476_v57 = vadd.f32 1.0, %v988_v55 }
 0x22a   :  { %v459_v59 = vmul.f32 %v990_v56, %v457_v53  ;;  %vm464_vm13 = vweird.f32 %v990_v56  ;;  %v382_v53 = vpop.f32.mrf.mxu0 }
 0x22b   :  { %991 = vrcp.f32 %v476_v57  ;;  %v415_v60 = vpop.f32.mrf.mxu1  ;;  %v488_v17 = vand.u32 2147483648, %v476_v57  ;;  %v486_v23 = vand.u32 2147483647, %v476_v57  ;;  %vm482_vm3 = vweird.f32 %v476_v57  ;;  %vm465_vm4 = vmor %vm463_vm2, %vm464_vm13 }
 0x22c   :  { %v448_v61 = vadd.f32 %v447_v58, %v415_v60  ;;  %v460_v62 = vsub.f32 1.0, %v459_v59  ;;  %v383_v54 = vadd.f32 %v382_v53, %v1234_v24 }
 0x22d   :  { %v489_v30 = vor.u32 1.1754944e-38, %v488_v17  ;;  %vm487_vm6 = vcmp.eq.f32.partialorder %v486_v23, 8.507059e+37 }
 0x22e   :  { %v453_v63 = vadd.f32 %v448_v61, %v1181_v21  ;;  %v461_v12 = vmul.f32 %v990_v56, %v460_v62  ;;  %386 = vst.msk [vmem:[#allocation2 + $0x2] sm:$0x3] %vm230_vm14, %v383_v54 }
 0x230   :  { %v914_v2 = vmul.f32 -1.442695, %v453_v63  ;;  %v462_v18 = vadd.f32 %v990_v56, %v461_v12 }
 0x231   :  { %v992_v10 = vpop.eup %991 }
 0x232   :  { %v478_v14 = vmul.f32 %v992_v10, %v476_v57  ;;  %993 = vpow2.f32 %v914_v2  ;;  %vm483_vm15 = vweird.f32 %v992_v10  ;;  %v466_v31 = vsel %vm465_vm4, %v990_v56, %v462_v18 }
 0x233   :  { %995 = vtanh.f32 %v452_v16  ;;  %vm484_vm5 = vmor %vm482_vm3, %vm483_vm15  ;;  %v471_v11 = vsel %vm468_vm7, %v470_v33, %v466_v31  ;;  %v933_v31 = vld [vmem:[%s1353_s0 + $0x10] sm:$0x7]  ;;  %s1059_s0 = smov [#allocation2]  }
 0x234   :  { %v479_v15 = vsub.f32 1.0, %v478_v14  ;;  %939 = vmatpush.msk.msra.mxu1 %vm60_vm0, %v933_v31  ;;  %s856_s17 = sshll.u32 %s1059_s0, 4  ;;  %s857_s17 = int_to_ptr.vmem [resolvable:$true] %s856_s17 }
 0x235   :  { %940 = vmatmul.msk.f32.vlgmr.msra.gmra.mxu1 %vm47_vm1, %v1168_v9 }
 0x236   :  { %v480_v19 = vmul.f32 %v992_v10, %v479_v15 }
 0x238   :  { %v994_v26 = vpop.eup %993  ;;  %v481_v28 = vadd.f32 %v992_v10, %v480_v19 }
 0x239   :  { %v496_v32 = vadd.f32 1.0, %v994_v26  ;;  %v996_v37 = vpop.eup %995 }
 0x23a   :  { %v485_v34 = vsel %vm484_vm5, %v992_v10, %v481_v28  ;;  %v513_v38 = vmul.f32 %v996_v37, %v471_v11 }
 0x23b   :  { %v490_v35 = vsel %vm487_vm6, %v489_v30, %v485_v34  ;;  %997 = vrcp.f32 %v496_v32  ;;  %v508_v44 = vand.u32 2147483648, %v496_v32  ;;  %v506_v46 = vand.u32 2147483647, %v496_v32 }
 0x23c   :  { %v512_v36 = vmul.f32 %v490_v35, %v1255_v29  ;;  %vm502_vm9 = vweird.f32 %v496_v32 }
 0x23d   :  { %v509_v48 = vor.u32 1.1754944e-38, %v508_v44  ;;  %vm507_vm11 = vcmp.eq.f32.partialorder %v506_v46, 8.507059e+37  ;;  %941 = vmatmul.msk.f32.gmra.mxu1 %vm47_vm1, %v1122_v3 }
 0x23e   :  { %v1275_v40 = vadd.f32 %v513_v38, %v512_v36 }
 0x240   :  { %999 = vtanh.f32 %v1275_v40 }
 0x241   :  { %v998_v39 = vpop.eup %997 }
 0x242   :  { %v498_v42 = vmul.f32 %v998_v39, %v496_v32  ;;  %vm503_vm8 = vweird.f32 %v998_v39 }
 0x243   :  { %vm504_vm10 = vmor %vm502_vm9, %vm503_vm8 }
 0x244   :  { %v499_v43 = vsub.f32 1.0, %v498_v42 }
 0x245   :  { %942 = vmatmul.msk.f32.gmra.mxu1 %vm47_vm1, %v1138_v5 }
 0x246   :  { %v500_v45 = vmul.f32 %v998_v39, %v499_v43  ;;  %v1000_v29 = vpop.eup %999 }
 0x248   :  { %v501_v47 = vadd.f32 %v998_v39, %v500_v45 }
 0x24a   :  { %v505_v49 = vsel %vm504_vm10, %v998_v39, %v501_v47 }
 0x24b   :  { %v510_v50 = vsel %vm507_vm11, %v509_v48, %v505_v49 }
 0x24c   :  { %v516_v51 = vmul.f32 %v1000_v29, %v510_v50 }
 0x24d   :  { %943 = vmatmul.msk.f32.gmra.mxu1 %vm47_vm1, %v1152_v7 }
 0x24e   :  { %915 = vmatpush.msk.msrb.mxu0 %vm60_vm0, %v516_v51  ;;  %918 = vmatpush.msk.msra.mxu2 %vm60_vm0, %v516_v51 }
 0x24f   :  { %916 = vmatmul.msk.f32.vlgmr.msrb.gmra.mxu0 %vm47_vm1, %v1205_v22  ;;  %919 = vmatmul.msk.f32.vlgmr.msra.gmra.mxu2 %vm47_vm1, %v1113_v1 }
 0x250   :  { %923 = vmatpush.msk.msra.mxu0 %vm60_vm0, %v917_v52 }
 0x257   :  { %924 = vmatmul.msk.f32.vlgmr.msra.gmra.mxu0 %vm47_vm1, %v1168_v9  ;;  %920 = vmatmul.msk.f32.gmra.mxu2 %vm47_vm1, %v1133_v4 }
 0x25f   :  { %925 = vmatmul.msk.f32.gmra.mxu0 %vm47_vm1, %v1122_v3  ;;  %921 = vmatmul.msk.f32.gmra.mxu2 %vm47_vm1, %v1147_v6 }
 0x267   :  { %926 = vmatmul.msk.f32.gmra.mxu0 %vm47_vm1, %v1138_v5  ;;  %922 = vmatmul.msk.f32.gmra.mxu2 %vm47_vm1, %v1161_v8 }
 0x26f   :  { %927 = vmatmul.msk.f32.gmra.mxu0 %vm47_vm1, %v1152_v7 }
 0x2b2   :  { %v748_v7 = vpop.f32.mrf.mxu1 }
 0x2cc   :  { %v537_v55 = vpop.f32.mrf.mxu0 }
 0x2cd   :  { %v538_v56 = vadd.f32 %v537_v55, %v1234_v24 }
 0x2cf   :  { %541 = vst.msk [vmem:[#allocation2 + $0x4] sm:$0x3] %vm230_vm14, %v538_v56 }
 0x2d2   :  { %v561_v57 = vpop.f32.mrf.mxu2 }
 0x2d4   :  { %v593_v58 = vpop.f32.mrf.mxu0 }
 0x2d5   :  { %v594_v59 = vadd.f32 %v593_v58, %v561_v57 }
 0x2d7   :  { %v605_v60 = vadd.f32 %v594_v59, %v1187_v27 }
 0x2d9   :  { %v928_v61 = vmul.f32 -1.442695, %v605_v60 }
 0x2da   :  { %v564_v62 = vpop.f32.mrf.mxu2 }
 0x2db   :  { %1001 = vpow2.f32 %v928_v61 }
 0x2dc   :  { %v596_v63 = vpop.f32.mrf.mxu0 }
 0x2dd   :  { %v597_v0 = vadd.f32 %v596_v63, %v564_v62 }
 0x2df   :  { %v606_v2 = vadd.f32 %v597_v0, %v1175_v13 }
 0x2e1   :  { %v1002_v10 = vpop.eup %1001  ;;  %v929_v12 = vmul.f32 -1.442695, %v606_v2 }
 0x2e2   :  { %v612_v14 = vadd.f32 1.0, %v1002_v10  ;;  %v567_v15 = vpop.f32.mrf.mxu2 }
 0x2e3   :  { %1003 = vpow2.f32 %v929_v12 }
 0x2e4   :  { %1005 = vrcp.f32 %v612_v14  ;;  %v599_v16 = vpop.f32.mrf.mxu0  ;;  %v624_v43 = vand.u32 2147483648, %v612_v14  ;;  %vm618_vm15 = vweird.f32 %v612_v14  ;;  %v622_v45 = vand.u32 2147483647, %v612_v14 }
 0x2e5   :  { %v600_v32 = vadd.f32 %v599_v16, %v567_v15 }
 0x2e6   :  { %v625_v29 = vor.u32 1.1754944e-38, %v624_v43  ;;  %vm623_vm6 = vcmp.eq.f32.partialorder %v622_v45, 8.507059e+37 }
 0x2e7   :  { %v607_v37 = vadd.f32 %v600_v32, %v1193_v41 }
 0x2e9   :  { %v1004_v17 = vpop.eup %1003 }
 0x2ea   :  { %v1006_v18 = vpop.eup %1005  ;;  %v631_v19 = vadd.f32 1.0, %v1004_v17  ;;  %v570_v20 = vpop.f32.mrf.mxu2 }
 0x2eb   :  { %v614_v23 = vmul.f32 %v1006_v18, %v612_v14  ;;  %vm619_vm12 = vweird.f32 %v1006_v18  ;;  %v751_v14 = vpop.f32.mrf.mxu1 }
 0x2ec   :  { %1007 = vrcp.f32 %v631_v19  ;;  %v602_v25 = vpop.f32.mrf.mxu0  ;;  %v643_v38 = vand.u32 2147483648, %v631_v19  ;;  %v641_v44 = vand.u32 2147483647, %v631_v19  ;;  %vm637_vm2 = vweird.f32 %v631_v19  ;;  %vm620_vm3 = vmor %vm618_vm15, %vm619_vm12 }
 0x2ed   :  { %v603_v26 = vadd.f32 %v602_v25, %v570_v20  ;;  %v615_v28 = vsub.f32 1.0, %v614_v23 }
 0x2ee   :  { %v644_v9 = vor.u32 1.1754944e-38, %v643_v38  ;;  %vm642_vm5 = vcmp.eq.f32.partialorder %v641_v44, 8.507059e+37 }
 0x2ef   :  { %v608_v30 = vadd.f32 %v603_v26, %v1181_v21  ;;  %v616_v35 = vmul.f32 %v1006_v18, %v615_v28 }
 0x2f1   :  { %v930_v33 = vmul.f32 -1.442695, %v608_v30  ;;  %v617_v39 = vadd.f32 %v1006_v18, %v616_v35 }
 0x2f2   :  { %v1008_v34 = vpop.eup %1007 }
 0x2f3   :  { %v633_v11 = vmul.f32 %v1008_v34, %v631_v19  ;;  %1009 = vpow2.f32 %v930_v33  ;;  %vm638_vm13 = vweird.f32 %v1008_v34  ;;  %v621_v48 = vsel %vm620_vm3, %v1006_v18, %v617_v39  ;;  %v754_v19 = vpop.f32.mrf.mxu1 }
 0x2f4   :  { %1011 = vtanh.f32 %v607_v37  ;;  %vm639_vm4 = vmor %vm637_vm2, %vm638_vm13  ;;  %v626_v52 = vsel %vm623_vm6, %v625_v29, %v621_v48 }
 0x2f5   :  { %v634_v36 = vsub.f32 1.0, %v633_v11 }
 0x2f7   :  { %v635_v42 = vmul.f32 %v1008_v34, %v634_v36 }
 0x2f9   :  { %v1010_v46 = vpop.eup %1009  ;;  %v636_v47 = vadd.f32 %v1008_v34, %v635_v42 }
 0x2fa   :  { %v651_v49 = vadd.f32 1.0, %v1010_v46  ;;  %v1012_v54 = vpop.eup %1011 }
 0x2fb   :  { %v640_v50 = vsel %vm639_vm4, %v1008_v34, %v636_v47  ;;  %v668_v55 = vmul.f32 %v1012_v54, %v626_v52  ;;  %v757_v28 = vpop.f32.mrf.mxu1 }
 0x2fc   :  { %v645_v51 = vsel %vm642_vm5, %v644_v9, %v640_v50  ;;  %1013 = vrcp.f32 %v651_v49  ;;  %v663_v3 = vand.u32 2147483648, %v651_v49  ;;  %v661_v61 = vand.u32 2147483647, %v651_v49 }
 0x2fd   :  { %v667_v53 = vmul.f32 %v645_v51, %v1275_v40  ;;  %vm657_vm8 = vweird.f32 %v651_v49 }
 0x2fe   :  { %v664_v40 = vor.u32 1.1754944e-38, %v663_v3  ;;  %vm662_vm10 = vcmp.eq.f32.partialorder %v661_v61, 8.507059e+37 }
 0x2ff   :  { %v1319_v57 = vadd.f32 %v668_v55, %v667_v53 }
 0x301   :  { %1015 = vtanh.f32 %v1319_v57 }
 0x302   :  { %v1014_v56 = vpop.eup %1013 }
 0x303   :  { %v653_v58 = vmul.f32 %v1014_v56, %v651_v49  ;;  %vm658_vm7 = vweird.f32 %v1014_v56 }
 0x304   :  { %vm659_vm9 = vmor %vm657_vm8, %vm658_vm7 }
 0x305   :  { %v654_v59 = vsub.f32 1.0, %v653_v58 }
 0x307   :  { %v655_v60 = vmul.f32 %v1014_v56, %v654_v59  ;;  %v1016_v0 = vpop.eup %1015 }
 0x309   :  { %v656_v62 = vadd.f32 %v1014_v56, %v655_v60 }
 0x30b   :  { %v660_v63 = vsel %vm659_vm9, %v1014_v56, %v656_v62 }
 0x30c   :  { %v665_v2 = vsel %vm662_vm10, %v664_v40, %v660_v63 }
 0x30d   :  { %v671_v5 = vmul.f32 %v1016_v0, %v665_v2 }
 0x30f   :  { %931 = vmatpush.msk.msrb.mxu2 %vm60_vm0, %v671_v5  ;;  %934 = vmatpush.msk.msra.mxu3 %vm60_vm0, %v671_v5 }
 0x310   :  { %935 = vmatmul.msk.f32.vlgmr.msra.gmra.mxu3 %vm47_vm1, %v1113_v1  ;;  %932 = vmatmul.msk.f32.vlgmr.msrb.gmra.mxu2 %vm47_vm1, %v1205_v22 }
 0x318   :  { %936 = vmatmul.msk.f32.gmra.mxu3 %vm47_vm1, %v1133_v4 }
 0x320   :  { %937 = vmatmul.msk.f32.gmra.mxu3 %vm47_vm1, %v1147_v6 }
 0x328   :  { %938 = vmatmul.msk.f32.gmra.mxu3 %vm47_vm1, %v1161_v8 }
 0x393   :  { %v716_v10 = vpop.f32.mrf.mxu3  ;;  %v692_v34 = vpop.f32.mrf.mxu2 }
 0x394   :  { %v749_v12 = vadd.f32 %v748_v7, %v716_v10  ;;  %v693_v11 = vadd.f32 %v692_v34, %v1234_v24 }
 0x396   :  { %v760_v15 = vadd.f32 %v749_v12, %v1187_v27  ;;  %696 = vst.msk [vmem:[#allocation2 + $0x6] sm:$0x3] %vm230_vm14, %v693_v11 }
 0x398   :  { %v944_v16 = vmul.f32 -1.442695, %v760_v15 }
 0x39a   :  { %1017 = vpow2.f32 %v944_v16 }
 0x39b   :  { %v719_v1 = vpop.f32.mrf.mxu3 }
 0x39c   :  { %v752_v17 = vadd.f32 %v751_v14, %v719_v1 }
 0x39e   :  { %v761_v18 = vadd.f32 %v752_v17, %v1175_v13 }
 0x3a0   :  { %v1018_v4 = vpop.eup %1017  ;;  %v945_v20 = vmul.f32 -1.442695, %v761_v18 }
 0x3a1   :  { %v767_v23 = vadd.f32 1.0, %v1018_v4 }
 0x3a2   :  { %1019 = vpow2.f32 %v945_v20 }
 0x3a3   :  { %1021 = vrcp.f32 %v767_v23  ;;  %v722_v6 = vpop.f32.mrf.mxu3  ;;  %vm773_vm13 = vweird.f32 %v767_v23  ;;  %v777_v47 = vand.u32 2147483647, %v767_v23 }
 0x3a4   :  { %v755_v13 = vadd.f32 %v754_v19, %v722_v6 }
 0x3a5   :  { %vm778_vm5 = vcmp.eq.f32.partialorder %v777_v47, 8.507059e+37 }
 0x3a6   :  { %v762_v42 = vadd.f32 %v755_v13, %v1193_v41 }
 0x3a8   :  { %v1020_v8 = vpop.eup %1019 }
 0x3a9   :  { %v1022_v25 = vpop.eup %1021  ;;  %v786_v26 = vadd.f32 1.0, %v1020_v8 }
 0x3aa   :  { %v769_v30 = vmul.f32 %v1022_v25, %v767_v23  ;;  %vm774_vm11 = vweird.f32 %v1022_v25 }
 0x3ab   :  { %1023 = vrcp.f32 %v786_v26  ;;  %v725_v27 = vpop.f32.mrf.mxu3  ;;  %v798_v43 = vand.u32 2147483648, %v786_v26  ;;  %v796_v46 = vand.u32 2147483647, %v786_v26  ;;  %vm792_vm15 = vweird.f32 %v786_v26  ;;  %vm775_vm2 = vmor %vm773_vm13, %vm774_vm11 }
 0x3ac   :  { %v758_v31 = vadd.f32 %v757_v28, %v725_v27  ;;  %v770_v32 = vsub.f32 1.0, %v769_v30 }
 0x3ad   :  { %v799_v49 = vor.u32 1.1754944e-38, %v798_v43  ;;  %vm797_vm4 = vcmp.eq.f32.partialorder %v796_v46, 8.507059e+37 }
 0x3ae   :  { %v763_v33 = vadd.f32 %v758_v31, %v1181_v21  ;;  %v771_v37 = vmul.f32 %v1022_v25, %v770_v32  ;;  %v779_v21 = vand.u32 2147483648, %v767_v23 }
 0x3b0   :  { %v946_v35 = vmul.f32 -1.442695, %v763_v33  ;;  %v772_v44 = vadd.f32 %v1022_v25, %v771_v37  ;;  %v780_v51 = vor.u32 1.1754944e-38, %v779_v21 }
 0x3b1   :  { %v1024_v36 = vpop.eup %1023 }
 0x3b2   :  { %v788_v38 = vmul.f32 %v1024_v36, %v786_v26  ;;  %1025 = vpow2.f32 %v946_v35  ;;  %vm793_vm12 = vweird.f32 %v1024_v36  ;;  %v776_v29 = vsel %vm775_vm2, %v1022_v25, %v772_v44 }
 0x3b3   :  { %1027 = vtanh.f32 %v762_v42  ;;  %vm794_vm3 = vmor %vm792_vm15, %vm793_vm12  ;;  %v781_v53 = vsel %vm778_vm5, %v780_v51, %v776_v29 }
 0x3b4   :  { %v789_v39 = vsub.f32 1.0, %v788_v38 }
 0x3b6   :  { %v790_v45 = vmul.f32 %v1024_v36, %v789_v39 }
 0x3b8   :  { %v1026_v9 = vpop.eup %1025  ;;  %v791_v48 = vadd.f32 %v1024_v36, %v790_v45 }
 0x3b9   :  { %v806_v50 = vadd.f32 1.0, %v1026_v9  ;;  %v1028_v55 = vpop.eup %1027 }
 0x3ba   :  { %v795_v41 = vsel %vm794_vm3, %v1024_v36, %v791_v48  ;;  %v823_v56 = vmul.f32 %v1028_v55, %v781_v53 }
 0x3bb   :  { %v800_v52 = vsel %vm797_vm4, %v799_v49, %v795_v41  ;;  %1029 = vrcp.f32 %v806_v50  ;;  %v818_v61 = vand.u32 2147483648, %v806_v50  ;;  %v816_v40 = vand.u32 2147483647, %v806_v50 }
 0x3bc   :  { %v822_v54 = vmul.f32 %v800_v52, %v1319_v57  ;;  %vm812_vm7 = vweird.f32 %v806_v50 }
 0x3bd   :  { %v819_v0 = vor.u32 1.1754944e-38, %v818_v61  ;;  %vm817_vm9 = vcmp.eq.f32.partialorder %v816_v40, 8.507059e+37 }
 0x3be   :  { %v824_v59 = vadd.f32 %v823_v56, %v822_v54 }
 0x3c0   :  { %1031 = vtanh.f32 %v824_v59 }
 0x3c1   :  { %v1030_v58 = vpop.eup %1029 }
 0x3c2   :  { %v808_v3 = vmul.f32 %v1030_v58, %v806_v50  ;;  %vm813_vm6 = vweird.f32 %v1030_v58 }
 0x3c3   :  { %vm814_vm8 = vmor %vm812_vm7, %vm813_vm6 }
 0x3c4   :  { %v809_v60 = vsub.f32 1.0, %v808_v3 }
 0x3c6   :  { %v810_v62 = vmul.f32 %v1030_v58, %v809_v60  ;;  %v1032_v5 = vpop.eup %1031 }
 0x3c8   :  { %v811_v63 = vadd.f32 %v1030_v58, %v810_v62 }
 0x3ca   :  { %v815_v2 = vsel %vm814_vm8, %v1030_v58, %v811_v63 }
 0x3cb   :  { %v820_v7 = vsel %vm817_vm9, %v819_v0, %v815_v2 }
 0x3cc   :  { %v826_v57 = vmul.f32 %v1032_v5, %v820_v7 }
 0x3ce   :  { %947 = vmatpush.msk.msra.mxu2 %vm60_vm0, %v826_v57 }
 0x3cf   :  { %948 = vmatmul.msk.f32.vlgmr.msra.gmra.mxu2 %vm47_vm1, %v1205_v22 }
 0x452   :  { %v847_v10 = vpop.f32.mrf.mxu2 }
 0x453   :  { %v848_v12 = vadd.f32 %v847_v10, %v1234_v24 }
 0x455   :  { %851 = vst.msk [vmem:[#allocation2 + $0x8] sm:$0x3] %vm230_vm14, %v848_v12 }
 0x456   :  { %864 = dma.vmem_to_hbm [thread:$0]  %s857_s17, 160, %s859_s20, [#allocation3], %s1060_s21, %s1060_s21, %s1061_s22  }
 0x457   :  { %1057 = dma.done.wait [#allocation3], 160  }
 0x458   :  { %1058 = vsyncadd [#allocation3], 4294967136 }
 0x459   :  { %869 = vsyncpa [#allocation3], 1 }

</bundles_post_ra>
